<compile_context>
chip_gen: v7x
topology: tpu7x:2x2x1
jax: 0.10.0
libtpu: 0.0.40
codegen_flags: <defaults>
</compile_context>

<pallas_src>
import functools
import math

import jax
import jax.numpy as jnp
from jax.experimental import pallas as pl
from jax.experimental.pallas import tpu as pltpu


def _nmt_loss_kernel(x_ref, t_ref, w_ref, b_ref, auxw_ref, auxb_ref, out_ref,
                     m_sc, l_sc, st_sc, *,
                     vocab_size, padding_idx, confidence, smoothing_value,
                     kconst, tv):
    j = pl.program_id(0)          # vocab tile (reduction axis, OUTER)
    i = pl.program_id(1)          # token tile (parallel axis, INNER)

    @pl.when(j == 0)
    def _init():
        m_sc[i] = jnp.full(m_sc.shape[1:], -jnp.inf, dtype=jnp.float32)
        l_sc[i] = jnp.zeros(l_sc.shape[1:], dtype=jnp.float32)
        st_sc[i] = jnp.zeros(st_sc.shape[1:], dtype=jnp.float32)

    # Generator projection on the MXU: bf16 operands, f32 accumulation.
    logits = jnp.dot(x_ref[...], w_ref[...],
                     preferred_element_type=jnp.float32) + b_ref[...]   # [tm, tv]

    # Online logsumexp over the (streamed) vocab axis.
    m_prev = m_sc[i]
    m_new = jnp.maximum(m_prev, jnp.max(logits, axis=-1, keepdims=True))
    alpha = jnp.exp(m_prev - m_new)
    l_sc[i] = alpha * l_sc[i] + jnp.sum(jnp.exp(logits - m_new),
                                        axis=-1, keepdims=True)
    m_sc[i] = m_new

    # Target-column logit (the target can live in any vocab tile).
    tgt = t_ref[...]                                               # [tm, 1] i32
    col = jax.lax.broadcasted_iota(jnp.int32, logits.shape, 1) + j * tv
    st_sc[i] += jnp.sum(jnp.where(col == tgt, logits, 0.0),
                        axis=-1, keepdims=True)

    @pl.when(j == pl.num_programs(0) - 1)
    def _finalize():
        lse = m_sc[i] + jnp.log(l_sc[i])                           # [tm, 1]
        score_t = st_sc[i] - lse                                   # log p(target)
        if smoothing_value > 0.0:
            # aux[:, 0] = sum_v logits_v over the REAL vocab, aux[:, 1] = logit_PAD,
            # computed analytically from rowsum(W) and W[:, PAD] (f32, once per
            # token tile -> replaces per-tile row-sum / PAD-column reductions).
            aux = jnp.dot(x_ref[...].astype(jnp.float32), auxw_ref[...],
                          preferred_element_type=jnp.float32) + auxb_ref[...]
            sum_scores = aux[:, 0:1] - vocab_size * lse            # sum_v log p(v)
            score_p = aux[:, 1:2] - lse                            # log p(PAD)
            per_row = (kconst
                       - confidence * score_t
                       - smoothing_value * (sum_scores - score_t - score_p))
        else:                                                      # NLLLoss path
            per_row = -score_t
        is_pad = (t_ref[...] == padding_idx)
        out_ref[...] = jnp.where(is_pad, 0.0, per_row).astype(out_ref.dtype)


def nmt_loss(tgt, output, w, b, *, padding_idx, label_smoothing=0.0,
             tm=256, tv=1024, vmem_limit_bytes=48 * 1024 * 1024):
    """tgt: [batch, tgt_len] int, output: [batch, tgt_len - 1, hidden],
    w: [hidden, vocab], b: [vocab].
    Returns the summed (unnormalized) loss, matching NMTLossCompute.forward."""
    hidden = output.shape[-1]
    vocab = w.shape[1]

    target = tgt[:, 1:].reshape(-1).astype(jnp.int32)              # [N]
    # bf16 activations once in the wrapper: halves activation DMA and removes
    # the per-vocab-tile in-kernel cast (the MXU already runs bf16 operands).
    x2d = output.reshape(-1, hidden).astype(jnp.bfloat16)          # [N, H]
    n_tokens = x2d.shape[0]

    confidence = 1.0 - label_smoothing
    if label_smoothing > 0.0:
        smoothing_value = label_smoothing / (vocab - 2)
        kconst = (vocab - 2) * smoothing_value * math.log(smoothing_value)
        if confidence > 0.0:
            kconst += confidence * math.log(confidence)
    else:
        smoothing_value = 0.0                                      # NLLLoss path
        kconst = 0.0

    # Token tile: multiple of 16 (bf16 sublane packing); pad ragged N with
    # PAD-target rows (they contribute exactly 0 to the loss).
    tm = max(16, ((min(tm, n_tokens) + 15) // 16) * 16)
    n_pad = pl.cdiv(n_tokens, tm) * tm
    if n_pad != n_tokens:
        x2d = jnp.pad(x2d, ((0, n_pad - n_tokens), (0, 0)))
        target = jnp.pad(target, (0, n_pad - n_tokens),
                         constant_values=padding_idx)
    targets2d = target.reshape(n_pad, 1)

    # TODO(synk): in a real training loop the bf16 weight copy and rowsum(W)
    # should be cached across steps instead of recomputed per call.
    w_bf16 = w if w.dtype == jnp.bfloat16 else w.astype(jnp.bfloat16)
    b_f32 = b.astype(jnp.float32)

    # Vocab (reduction) tile: fixed lane-dense multiple of 128.  Pad the vocab
    # up with zero weight columns and a -1e30 bias (so padded columns vanish
    # from the logsumexp) instead of falling back to a full-vocab VMEM tile.
    tv = max(128, (int(tv) // 128) * 128)
    v_round = ((vocab + 127) // 128) * 128
    if v_round <= tv:
        tv = v_round
    v_pad = pl.cdiv(vocab, tv) * tv
    if v_pad != vocab:
        w_bf16 = jnp.pad(w_bf16, ((0, 0), (0, v_pad - vocab)))
        b_f32 = jnp.pad(b_f32, (0, v_pad - vocab), constant_values=-1e30)
    b2d = b_f32.reshape(1, v_pad)

    # Aux vectors for the analytic label-smoothing terms (from the REAL vocab):
    # lane 0 = rowsum(W) / sum(b), lane 1 = W[:, PAD] / b[PAD]; padded to 128
    # lanes so the finalize matmul is a single lane-dense MXU pass.
    auxw = jnp.zeros((hidden, 128), jnp.float32)
    auxb = jnp.zeros((1, 128), jnp.float32)
    if smoothing_value > 0.0:
        auxw = auxw.at[:, 0].set(jnp.sum(w.astype(jnp.float32), axis=1))
        auxw = auxw.at[:, 1].set(w[:, padding_idx].astype(jnp.float32))
        auxb = auxb.at[0, 0].set(jnp.sum(b.astype(jnp.float32)))
        auxb = auxb.at[0, 1].set(b[padding_idx].astype(jnp.float32))

    n_vtiles = v_pad // tv
    n_ttiles = n_pad // tm
    grid = (n_vtiles, n_ttiles)     # vocab (reduction) OUTER, tokens INNER

    kernel = functools.partial(
        _nmt_loss_kernel,
        vocab_size=float(vocab), padding_idx=int(padding_idx),
        confidence=float(confidence), smoothing_value=float(smoothing_value),
        kconst=float(kconst), tv=int(tv))

    per_row = pl.pallas_call(
        kernel,
        out_shape=jax.ShapeDtypeStruct((n_pad, 1), jnp.float32),
        grid_spec=pltpu.PrefetchScalarGridSpec(
            num_scalar_prefetch=0,
            grid=grid,
            in_specs=[
                pl.BlockSpec((tm, hidden), lambda j, i: (i, 0)),    # activations (bf16)
                pl.BlockSpec((tm, 1), lambda j, i: (i, 0)),         # target ids
                pl.BlockSpec((hidden, tv), lambda j, i: (0, j)),    # generator W (bf16), streamed once
                pl.BlockSpec((1, tv), lambda j, i: (0, j)),         # generator b
                pl.BlockSpec((hidden, 128), lambda j, i: (0, 0)),   # [rowsum(W), W[:,PAD], 0...]
                pl.BlockSpec((1, 128), lambda j, i: (0, 0)),        # [sum(b), b[PAD], 0...]
            ],
            out_specs=pl.BlockSpec((tm, 1), lambda j, i: (i, 0)),
            # Per-token-tile online-softmax state (m, l, target-logit),
            # persistent across the outer vocab reduction.
            scratch_shapes=[pltpu.VMEM((n_ttiles, tm, 1), jnp.float32)] * 3,
        ),
        compiler_params=pltpu.CompilerParams(
            # token axis stays "parallel" so v7x megacore can shard token tiles;
            # the vocab reduction stays within a core.
            dimension_semantics=("arbitrary", "parallel"),
            vmem_limit_bytes=int(vmem_limit_bytes)),
    )(x2d, targets2d, w_bf16, b2d, auxw, auxb)

    # NOTE: the PyTorch module computes `normalization` but calls the
    # out-of-place `loss.div(...)` and discards the result, so the returned
    # loss is the unnormalized sum -- reproduced exactly here.
    return jnp.sum(per_row)


def _reference(tgt, output, w, b, padding_idx, label_smoothing):
    """Pure-JAX f32 re-implementation of NMTLossCompute.forward."""
    target = tgt[:, 1:].reshape(-1)
    vocab = w.shape[1]
    x = output.reshape(-1, output.shape[-1]).astype(jnp.float32)
    scores = jax.nn.log_softmax(x @ w.astype(jnp.float32)
                                + b.astype(jnp.float32), axis=-1)
    n = target.shape[0]
    if label_smoothing > 0.0:
        smoothing_value = label_smoothing / (vocab - 2)
        confidence = 1.0 - label_smoothing
        one_hot = jnp.full((vocab,), smoothing_value).at[padding_idx].set(0.0)
        model_prob = jnp.tile(one_hot[None, :], (n, 1))
        model_prob = model_prob.at[jnp.arange(n), target].set(confidence)
        model_prob = jnp.where((target == padding_idx)[:, None], 0.0, model_prob)
        safe_log = jnp.log(jnp.where(model_prob > 0, model_prob, 1.0))
        loss = jnp.sum(jnp.where(model_prob > 0,
                                 model_prob * (safe_log - scores), 0.0))
    else:
        picked = jnp.take_along_axis(scores, target[:, None], axis=-1)[:, 0]
        loss = -jnp.sum(jnp.where(target == padding_idx, 0.0, picked))
    return loss


if __name__ == "__main__":
    # TODO(synk): `generator` is an injected nn.Module in PyTorch; modeled here
    # as the standard Linear(H, V) + LogSoftmax head the criterion expects.
    padding_idx = 0
    key = jax.random.PRNGKey(0)

    def make_case(k, batch, seq, hidden, vocab):
        k_out, k_w, k_b, k_t = jax.random.split(k, 4)
        out = jax.random.normal(k_out, (batch, seq, hidden), jnp.float32)
        lim = math.sqrt(6.0 / (hidden + vocab))
        w = jax.random.uniform(k_w, (hidden, vocab), jnp.float32, -lim, lim)
        b = jax.random.uniform(k_b, (vocab,), jnp.float32, -0.1, 0.1)
        # tgt: [batch, seq+1]; position 0 is the BOS-like token, trailing PADs.
        tgt = jax.random.randint(k_t, (batch, seq + 1), 1, vocab).astype(jnp.int32)
        tgt = tgt.at[0, -2:].set(padding_idx)
        tgt = tgt.at[-1, -1:].set(padding_idx)
        return tgt, out, w, b

    k1, k2, k3 = jax.random.split(key, 3)

    # Case 1: label-smoothed KL loss, lane-dense vocab (single tile pair).
    tgt, output, w, b = make_case(k1, batch=2, seq=8, hidden=32, vocab=256)
    loss = jax.block_until_ready(
        nmt_loss(tgt, output, w, b, padding_idx=padding_idx, label_smoothing=0.1))
    ref = _reference(tgt, output, w, b, padding_idx, 0.1)
    assert jnp.allclose(loss, ref, rtol=2e-2, atol=1e-2), ("case1", loss, ref)

    # Case 2: NLL path (label_smoothing == 0).
    loss = jax.block_until_ready(
        nmt_loss(tgt, output, w, b, padding_idx=padding_idx, label_smoothing=0.0))
    ref = _reference(tgt, output, w, b, padding_idx, 0.0)
    assert jnp.allclose(loss, ref, rtol=2e-2, atol=1e-2), ("case2", loss, ref)

    # Case 3: non-128-divisible vocab (padded with -1e30 bias) and a multi-tile
    # grid (2 vocab tiles x 2 token tiles) exercising the streamed reduction
    # with persistent per-token-tile scratch.
    tgt, output, w, b = make_case(k3, batch=4, seq=8, hidden=32, vocab=200)
    loss = jax.block_until_ready(
        nmt_loss(tgt, output, w, b, padding_idx=padding_idx,
                 label_smoothing=0.1, tm=16, tv=128))
    ref = _reference(tgt, output, w, b, padding_idx, 0.1)
    assert jnp.allclose(loss, ref, rtol=2e-2, atol=1e-2), ("case3", loss, ref)

    print("KERNEL_OK")
</pallas_src>

<mosaic_0001>
module attributes {stable_mosaic.version = 11 : i64} {
  func.func @_nmt_loss_kernel(%arg0: i32, %arg1: i32, %arg2: memref<16x32xbf16, #tpu.memory_space<vmem>>, %arg3: memref<16x1xi32, #tpu.memory_space<vmem>>, %arg4: memref<32x256xbf16, #tpu.memory_space<vmem>>, %arg5: memref<1x256xf32, #tpu.memory_space<vmem>>, %arg6: memref<32x128xf32, #tpu.memory_space<vmem>>, %arg7: memref<1x128xf32, #tpu.memory_space<vmem>>, %arg8: memref<16x1xf32, #tpu.memory_space<vmem>>, %arg9: memref<1x16x1xf32, #tpu.memory_space<vmem>>, %arg10: memref<1x16x1xf32, #tpu.memory_space<vmem>>, %arg11: memref<1x16x1xf32, #tpu.memory_space<vmem>>) attributes {dimension_semantics = [#tpu.dimension_semantics<arbitrary>, #tpu.dimension_semantics<parallel>], iteration_bounds = array<i64: 1, 1>, scalar_prefetch = 0 : i64, scratch_operands = 3 : i64, tpu.core_type = #tpu.core_type<tc>, window_params = [{transform_indices = @transform_0, window_bounds = array<i64: 16, 32>}, {transform_indices = @transform_1, window_bounds = array<i64: 16, 1>}, {transform_indices = @transform_2, window_bounds = array<i64: 32, 256>}, {transform_indices = @transform_3, window_bounds = array<i64: 1, 256>}, {pipeline_mode = #tpu.pipeline_mode<synchronous>, transform_indices = @transform_4, window_bounds = array<i64: 32, 128>}, {pipeline_mode = #tpu.pipeline_mode<synchronous>, transform_indices = @transform_5, window_bounds = array<i64: 1, 128>}, {transform_indices = @transform_6, window_bounds = array<i64: 16, 1>}]} {
    %c0_i32 = arith.constant 0 : i32
    %0 = arith.cmpi eq, %arg0, %c0_i32 : i32
    %1 = arith.extui %0 : i1 to i32
    %c0_i32_0 = arith.constant 0 : i32
    %2 = arith.cmpi ne, %1, %c0_i32_0 : i32
    scf.if %2 {
      %cst_26 = arith.constant 0xFF800000 : f32
      %57 = vector.broadcast %cst_26 : f32 to vector<16x1xf32>
      %58 = arith.index_cast %arg1 : i32 to index
      %c0_27 = arith.constant 0 : index
      %c0_28 = arith.constant 0 : index
      %59 = vector.load %arg9[%58, %c0_27, %c0_28] : memref<1x16x1xf32, #tpu.memory_space<vmem>>, vector<1x16x1xf32>
      %60 = vector.shape_cast %59 : vector<1x16x1xf32> to vector<16x1xf32>
      %61 = vector.shape_cast %57 : vector<16x1xf32> to vector<1x16x1xf32>
      tpu.vector_store %arg9[%58, %c0_27, %c0_28], %61 {strides = array<i32>} : memref<1x16x1xf32, #tpu.memory_space<vmem>>, vector<1x16x1xf32>,
      %cst_29 = arith.constant 0.000000e+00 : f32
      %62 = vector.broadcast %cst_29 : f32 to vector<16x1xf32>
      %63 = arith.index_cast %arg1 : i32 to index
      %c0_30 = arith.constant 0 : index
      %c0_31 = arith.constant 0 : index
      %64 = vector.load %arg10[%63, %c0_30, %c0_31] : memref<1x16x1xf32, #tpu.memory_space<vmem>>, vector<1x16x1xf32>
      %65 = vector.shape_cast %64 : vector<1x16x1xf32> to vector<16x1xf32>
      %66 = vector.shape_cast %62 : vector<16x1xf32> to vector<1x16x1xf32>
      tpu.vector_store %arg10[%63, %c0_30, %c0_31], %66 {strides = array<i32>} : memref<1x16x1xf32, #tpu.memory_space<vmem>>, vector<1x16x1xf32>,
      %cst_32 = arith.constant 0.000000e+00 : f32
      %67 = vector.broadcast %cst_32 : f32 to vector<16x1xf32>
      %68 = arith.index_cast %arg1 : i32 to index
      %c0_33 = arith.constant 0 : index
      %c0_34 = arith.constant 0 : index
      %69 = vector.load %arg11[%68, %c0_33, %c0_34] : memref<1x16x1xf32, #tpu.memory_space<vmem>>, vector<1x16x1xf32>
      %70 = vector.shape_cast %69 : vector<1x16x1xf32> to vector<16x1xf32>
      %71 = vector.shape_cast %67 : vector<16x1xf32> to vector<1x16x1xf32>
      tpu.vector_store %arg11[%68, %c0_33, %c0_34], %71 {strides = array<i32>} : memref<1x16x1xf32, #tpu.memory_space<vmem>>, vector<1x16x1xf32>,
    } else {
    }
    %c0 = arith.constant 0 : index
    %c0_1 = arith.constant 0 : index
    %3 = vector.load %arg2[%c0, %c0_1] : memref<16x32xbf16, #tpu.memory_space<vmem>>, vector<16x32xbf16>
    %c0_2 = arith.constant 0 : index
    %c0_3 = arith.constant 0 : index
    %4 = vector.load %arg4[%c0_2, %c0_3] : memref<32x256xbf16, #tpu.memory_space<vmem>>, vector<32x256xbf16>
    %cst = arith.constant dense<0.000000e+00> : vector<16x256xf32>
    %5 = tpu.matmul %3, %4, %cst {dimension_numbers = #tpu.dot_dimension_numbers<[1], [0], [0], [1], [0, 0, 1, 1], [], []>} : vector<16x32xbf16>, vector<32x256xbf16>, vector<16x256xf32> -> vector<16x256xf32>
    %c0_4 = arith.constant 0 : index
    %c0_5 = arith.constant 0 : index
    %6 = vector.load %arg5[%c0_4, %c0_5] : memref<1x256xf32, #tpu.memory_space<vmem>>, vector<1x256xf32>
    %7 = vector.broadcast %6 : vector<1x256xf32> to vector<16x256xf32>
    %8 = arith.addf %5, %7 : vector<16x256xf32>
    %9 = arith.index_cast %arg1 : i32 to index
    %c0_6 = arith.constant 0 : index
    %c0_7 = arith.constant 0 : index
    %10 = vector.load %arg9[%9, %c0_6, %c0_7] : memref<1x16x1xf32, #tpu.memory_space<vmem>>, vector<1x16x1xf32>
    %11 = vector.shape_cast %10 : vector<1x16x1xf32> to vector<16x1xf32>
    %cst_8 = arith.constant dense<0xFF800000> : vector<16xf32>
    %12 = vector.multi_reduction <maximumf>, %8, %cst_8 [1] : vector<16x256xf32> to vector<16xf32>
    %13 = vector.shape_cast %12 : vector<16xf32> to vector<16x1xf32>
    %14 = arith.maximumf %11, %13 : vector<16x1xf32>
    %15 = arith.subf %11, %14 : vector<16x1xf32>
    %16 = math.exp %15 : vector<16x1xf32>
    %17 = arith.index_cast %arg1 : i32 to index
    %c0_9 = arith.constant 0 : index
    %c0_10 = arith.constant 0 : index
    %18 = vector.load %arg10[%17, %c0_9, %c0_10] : memref<1x16x1xf32, #tpu.memory_space<vmem>>, vector<1x16x1xf32>
    %19 = vector.shape_cast %18 : vector<1x16x1xf32> to vector<16x1xf32>
    %20 = arith.mulf %16, %19 : vector<16x1xf32>
    %21 = vector.broadcast %14 : vector<16x1xf32> to vector<16x256xf32>
    %22 = arith.subf %8, %21 : vector<16x256xf32>
    %23 = math.exp %22 : vector<16x256xf32>
    %cst_11 = arith.constant dense<0.000000e+00> : vector<16xf32>
    %24 = vector.multi_reduction <add>, %23, %cst_11 [1] : vector<16x256xf32> to vector<16xf32>
    %25 = vector.shape_cast %24 : vector<16xf32> to vector<16x1xf32>
    %26 = arith.addf %20, %25 : vector<16x1xf32>
    %27 = arith.index_cast %arg1 : i32 to index
    %c0_12 = arith.constant 0 : index
    %c0_13 = arith.constant 0 : index
    %28 = vector.load %arg10[%27, %c0_12, %c0_13] : memref<1x16x1xf32, #tpu.memory_space<vmem>>, vector<1x16x1xf32>
    %29 = vector.shape_cast %28 : vector<1x16x1xf32> to vector<16x1xf32>
    %30 = vector.shape_cast %26 : vector<16x1xf32> to vector<1x16x1xf32>
    tpu.vector_store %arg10[%27, %c0_12, %c0_13], %30 {strides = array<i32>} : memref<1x16x1xf32, #tpu.memory_space<vmem>>, vector<1x16x1xf32>,
    %31 = arith.index_cast %arg1 : i32 to index
    %c0_14 = arith.constant 0 : index
    %c0_15 = arith.constant 0 : index
    %32 = vector.load %arg9[%31, %c0_14, %c0_15] : memref<1x16x1xf32, #tpu.memory_space<vmem>>, vector<1x16x1xf32>
    %33 = vector.shape_cast %32 : vector<1x16x1xf32> to vector<16x1xf32>
    %34 = vector.shape_cast %14 : vector<16x1xf32> to vector<1x16x1xf32>
    tpu.vector_store %arg9[%31, %c0_14, %c0_15], %34 {strides = array<i32>} : memref<1x16x1xf32, #tpu.memory_space<vmem>>, vector<1x16x1xf32>,
    %c0_16 = arith.constant 0 : index
    %c0_17 = arith.constant 0 : index
    %35 = vector.load %arg3[%c0_16, %c0_17] : memref<16x1xi32, #tpu.memory_space<vmem>>, vector<16x1xi32>
    %36 = tpu.iota {dimensions = array<i32: 1>} : vector<16x256xi32>
    %c256_i32 = arith.constant 256 : i32
    %37 = arith.muli %arg0, %c256_i32 : i32
    %38 = vector.broadcast %37 : i32 to vector<16x256xi32>
    %39 = arith.addi %36, %38 : vector<16x256xi32>
    %40 = arith.index_cast %arg1 : i32 to index
    %c0_18 = arith.constant 0 : index
    %c0_19 = arith.constant 0 : index
    %41 = vector.load %arg11[%40, %c0_18, %c0_19] : memref<1x16x1xf32, #tpu.memory_space<vmem>>, vector<1x16x1xf32>
    %42 = vector.shape_cast %41 : vector<1x16x1xf32> to vector<16x1xf32>
    %43 = vector.broadcast %35 : vector<16x1xi32> to vector<16x256xi32>
    %44 = arith.cmpi eq, %39, %43 : vector<16x256xi32>
    %cst_20 = arith.constant 0.000000e+00 : f32
    %45 = vector.broadcast %cst_20 : f32 to vector<16x256xf32>
    %46 = arith.select %44, %8, %45 : vector<16x256xi1>, vector<16x256xf32>
    %cst_21 = arith.constant dense<0.000000e+00> : vector<16xf32>
    %47 = vector.multi_reduction <add>, %46, %cst_21 [1] : vector<16x256xf32> to vector<16xf32>
    %48 = vector.shape_cast %47 : vector<16xf32> to vector<16x1xf32>
    %49 = arith.addf %42, %48 : vector<16x1xf32>
    %50 = arith.index_cast %arg1 : i32 to index
    %c0_22 = arith.constant 0 : index
    %c0_23 = arith.constant 0 : index
    %51 = vector.load %arg11[%50, %c0_22, %c0_23] : memref<1x16x1xf32, #tpu.memory_space<vmem>>, vector<1x16x1xf32>
    %52 = vector.shape_cast %51 : vector<1x16x1xf32> to vector<16x1xf32>
    %53 = vector.shape_cast %49 : vector<16x1xf32> to vector<1x16x1xf32>
    tpu.vector_store %arg11[%50, %c0_22, %c0_23], %53 {strides = array<i32>} : memref<1x16x1xf32, #tpu.memory_space<vmem>>, vector<1x16x1xf32>,
    %c0_i32_24 = arith.constant 0 : i32
    %54 = arith.cmpi eq, %arg0, %c0_i32_24 : i32
    %55 = arith.extui %54 : i1 to i32
    %c0_i32_25 = arith.constant 0 : i32
    %56 = arith.cmpi ne, %55, %c0_i32_25 : i32
    scf.if %56 {
      %57 = arith.index_cast %arg1 : i32 to index
      %c0_26 = arith.constant 0 : index
      %c0_27 = arith.constant 0 : index
      %58 = vector.load %arg9[%57, %c0_26, %c0_27] : memref<1x16x1xf32, #tpu.memory_space<vmem>>, vector<1x16x1xf32>
      %59 = vector.shape_cast %58 : vector<1x16x1xf32> to vector<16x1xf32>
      %60 = arith.index_cast %arg1 : i32 to index
      %c0_28 = arith.constant 0 : index
      %c0_29 = arith.constant 0 : index
      %61 = vector.load %arg10[%60, %c0_28, %c0_29] : memref<1x16x1xf32, #tpu.memory_space<vmem>>, vector<1x16x1xf32>
      %62 = vector.shape_cast %61 : vector<1x16x1xf32> to vector<16x1xf32>
      %63 = math.log %62 : vector<16x1xf32>
      %64 = arith.addf %59, %63 : vector<16x1xf32>
      %65 = arith.index_cast %arg1 : i32 to index
      %c0_30 = arith.constant 0 : index
      %c0_31 = arith.constant 0 : index
      %66 = vector.load %arg11[%65, %c0_30, %c0_31] : memref<1x16x1xf32, #tpu.memory_space<vmem>>, vector<1x16x1xf32>
      %67 = vector.shape_cast %66 : vector<1x16x1xf32> to vector<16x1xf32>
      %68 = arith.subf %67, %64 : vector<16x1xf32>
      %c0_32 = arith.constant 0 : index
      %c0_33 = arith.constant 0 : index
      %69 = vector.load %arg2[%c0_32, %c0_33] : memref<16x32xbf16, #tpu.memory_space<vmem>>, vector<16x32xbf16>
      %70 = arith.extf %69 : vector<16x32xbf16> to vector<16x32xf32>
      %c0_34 = arith.constant 0 : index
      %c0_35 = arith.constant 0 : index
      %71 = vector.load %arg6[%c0_34, %c0_35] : memref<32x128xf32, #tpu.memory_space<vmem>>, vector<32x128xf32>
      %cst_36 = arith.constant dense<0.000000e+00> : vector<16x128xf32>
      %72 = tpu.matmul %70, %71, %cst_36 {dimension_numbers = #tpu.dot_dimension_numbers<[1], [0], [0], [1], [0, 0, 1, 1], [], []>} : vector<16x32xf32>, vector<32x128xf32>, vector<16x128xf32> -> vector<16x128xf32>
      %c0_37 = arith.constant 0 : index
      %c0_38 = arith.constant 0 : index
      %73 = vector.load %arg7[%c0_37, %c0_38] : memref<1x128xf32, #tpu.memory_space<vmem>>, vector<1x128xf32>
      %74 = vector.broadcast %73 : vector<1x128xf32> to vector<16x128xf32>
      %75 = arith.addf %72, %74 : vector<16x128xf32>
      %76 = vector.extract_strided_slice %75 {offsets = [0, 0], sizes = [16, 1], strides = [1, 1]} : vector<16x128xf32> to vector<16x1xf32>
      %cst_39 = arith.constant 2.560000e+02 : f32
      %77 = vector.broadcast %cst_39 : f32 to vector<16x1xf32>
      %78 = arith.mulf %77, %64 : vector<16x1xf32>
      %79 = arith.subf %76, %78 : vector<16x1xf32>
      %80 = vector.extract_strided_slice %75 {offsets = [0, 1], sizes = [16, 1], strides = [1, 1]} : vector<16x128xf32> to vector<16x1xf32>
      %81 = arith.subf %80, %64 : vector<16x1xf32>
      %cst_40 = arith.constant 0.899999976 : f32
      %82 = vector.broadcast %cst_40 : f32 to vector<16x1xf32>
      %83 = arith.mulf %82, %68 : vector<16x1xf32>
      %cst_41 = arith.constant -0.878816425 : f32
      %84 = vector.broadcast %cst_41 : f32 to vector<16x1xf32>
      %85 = arith.subf %84, %83 : vector<16x1xf32>
      %86 = arith.subf %79, %68 : vector<16x1xf32>
      %87 = arith.subf %86, %81 : vector<16x1xf32>
      %cst_42 = arith.constant 3.93700786E-4 : f32
      %88 = vector.broadcast %cst_42 : f32 to vector<16x1xf32>
      %89 = arith.mulf %88, %87 : vector<16x1xf32>
      %90 = arith.subf %85, %89 : vector<16x1xf32>
      %c0_43 = arith.constant 0 : index
      %c0_44 = arith.constant 0 : index
      %91 = vector.load %arg3[%c0_43, %c0_44] : memref<16x1xi32, #tpu.memory_space<vmem>>, vector<16x1xi32>
      %c0_i32_45 = arith.constant 0 : i32
      %92 = vector.broadcast %c0_i32_45 : i32 to vector<16x1xi32>
      %93 = arith.cmpi eq, %91, %92 : vector<16x1xi32>
      %cst_46 = arith.constant 0.000000e+00 : f32
      %94 = vector.broadcast %cst_46 : f32 to vector<16x1xf32>
      %95 = arith.select %93, %94, %90 : vector<16x1xi1>, vector<16x1xf32>
      %c0_47 = arith.constant 0 : index
      %c0_48 = arith.constant 0 : index
      %96 = vector.load %arg8[%c0_47, %c0_48] : memref<16x1xf32, #tpu.memory_space<vmem>>, vector<16x1xf32>
      tpu.vector_store %arg8[%c0_47, %c0_48], %95 {strides = array<i32>} : memref<16x1xf32, #tpu.memory_space<vmem>>, vector<16x1xf32>,
    } else {
    }
    return
  }
  func.func @transform_0(%arg0: i32, %arg1: i32) -> (i32, i32) {
    %c0_i32 = arith.constant 0 : i32
    %c0_i32_0 = arith.constant 0 : i32
    return %arg1, %c0_i32 : i32, i32
  }
  func.func @transform_1(%arg0: i32, %arg1: i32) -> (i32, i32) {
    %c0_i32 = arith.constant 0 : i32
    %c0_i32_0 = arith.constant 0 : i32
    return %arg1, %c0_i32 : i32, i32
  }
  func.func @transform_2(%arg0: i32, %arg1: i32) -> (i32, i32) {
    %c0_i32 = arith.constant 0 : i32
    %c0_i32_0 = arith.constant 0 : i32
    return %c0_i32, %arg0 : i32, i32
  }
  func.func @transform_3(%arg0: i32, %arg1: i32) -> (i32, i32) {
    %c0_i32 = arith.constant 0 : i32
    %c0_i32_0 = arith.constant 0 : i32
    return %c0_i32, %arg0 : i32, i32
  }
  func.func @transform_4(%arg0: i32, %arg1: i32) -> (i32, i32) {
    %c0_i32 = arith.constant 0 : i32
    %c0_i32_0 = arith.constant 0 : i32
    %c0_i32_1 = arith.constant 0 : i32
    return %c0_i32, %c0_i32_0 : i32, i32
  }
  func.func @transform_5(%arg0: i32, %arg1: i32) -> (i32, i32) {
    %c0_i32 = arith.constant 0 : i32
    %c0_i32_0 = arith.constant 0 : i32
    %c0_i32_1 = arith.constant 0 : i32
    return %c0_i32, %c0_i32_0 : i32, i32
  }
  func.func @transform_6(%arg0: i32, %arg1: i32) -> (i32, i32) {
    %c0_i32 = arith.constant 0 : i32
    %c0_i32_0 = arith.constant 0 : i32
    return %arg1, %c0_i32 : i32, i32
  }
}

</mosaic_0001>

<bundles_post_ra>
// kernel: tpu_custom_call.1
= control target key start
LH: loop header
LB: loop body
LE: loop exit
PB: predicated region body
PF: predicated region fallthrough
CT: control target
= control target key end

     0   :  { %11 = vsyncpa [#allocation6], 0  ;;  %s725_s0 = inlined_call_operand.hbm [shape: bf16[16,32], index: 0, kind: input, shape index: {}]   ;;  %s726_s1 = inlined_call_operand.vmem [shape: s32[16,1], index: 1, kind: input, shape index: {}]   ;;  %s727_s2 = inlined_call_operand.hbm [shape: bf16[32,256], index: 2, kind: input, shape index: {}]   ;;  %s728_s3 = inlined_call_operand.hbm [shape: f32[1,256], index: 3, kind: input, shape index: {}]   ;;  %s729_s4 = inlined_call_operand.vmem [shape: f32[32,128], index: 4, kind: input, shape index: {}]   ;;  %s730_s5 = inlined_call_operand.vmem [shape: f32[1,128], index: 5, kind: input, shape index: {}]   ;;  %s731_s6 = inlined_call_operand.vmem [shape: f32[16,1], index: 6, kind: output, shape index: {}]  }
   0x1   :  { %12 = vsyncpa [#allocation8], 0  ;;  %s568_s21 = smov [#allocation7]   ;;  %s498_s25 = scalar_lea.hbm %s727_s2, 512 }
   0x2   :  { %s32_s22 = sshll.u32 %s568_s21, 4  ;;  %p499_p0 = scmp.ne.s32.totalorder %s727_s2, %s498_s25  ;;  %s33_s22 = int_to_ptr.vmem [resolvable:$true] %s32_s22 }
   0x3   :  { %p502_p1 = scmp.lt.u32.totalorder %s498_s25, %s727_s2 }
   0x5   :  { %p504_p2 = pnand %p502_p1, %p499_p0 }
   0x7   :  { %507 = shalt.err (!%p504_p2)
}
   0x8   :  { %s508_s30 = scalar_lea.vmem %s33_s22, 512  ;;  %p513_p4 = scmp.lt.s32.totalorder %s33_s22, %s33_s22 }
   0x9   :  { %p509_p3 = scmp.ne.s32.totalorder %s33_s22, %s508_s30  ;;  %p514_p5 = scmp.lt.s32.totalorder %s508_s30, %s508_s30 }
   0xb   :  { %p515_p6 = por %p514_p5, %p513_p4 }
   0xd   :  { %p516_p7 = pnand %p515_p6, %p509_p3 }
   0xf   :  { %519 = shalt.err (!%p516_p7)
}
  0x10   :  { %s569_s7 = smov 128   ;;  %s570_s8 = smov 8  }
  0x11   :  { %38 = dma.hbm_to_vmem [thread:$0]  %s727_s2, 512, %s33_s22, [#allocation8], %s569_s7, %s569_s7, %s570_s8  }
  0x12   :  { %s571_s11 = smov [#allocation5]   ;;  %s520_s15 = scalar_lea.hbm %s725_s0, 128 }
  0x13   :  { %s18_s12 = sshll.u32 %s571_s11, 4  ;;  %p521_p8 = scmp.ne.s32.totalorder %s725_s0, %s520_s15  ;;  %s19_s12 = int_to_ptr.vmem [resolvable:$true] %s18_s12 }
  0x14   :  { %p524_p9 = scmp.lt.u32.totalorder %s520_s15, %s725_s0 }
  0x16   :  { %p526_p10 = pnand %p524_p9, %p521_p8 }
  0x18   :  { %529 = shalt.err (!%p526_p10)
}
  0x19   :  { %s530_s20 = scalar_lea.vmem %s19_s12, 128  ;;  %p535_p12 = scmp.lt.s32.totalorder %s19_s12, %s19_s12 }
  0x1a   :  { %p531_p11 = scmp.ne.s32.totalorder %s19_s12, %s530_s20  ;;  %p536_p13 = scmp.lt.s32.totalorder %s530_s20, %s530_s20 }
  0x1c   :  { %p537_p0 = por %p536_p13, %p535_p12 }
  0x1e   :  { %p538_p1 = pnand %p537_p0, %p531_p11 }
  0x20   :  { %541 = shalt.err (!%p538_p1)
}
  0x21   :  { %s572_s2 = smov 64   ;;  %s573_s21 = smov 4  }
  0x22   :  { %24 = dma.hbm_to_vmem [thread:$0]  %s725_s0, 128, %s19_s12, [#allocation6], %s572_s2, %s572_s2, %s573_s21  }
  0x23   :  { %s574_s24 = smov [#allocation9]   ;;  %s542_s28 = scalar_lea.hbm %s728_s3, 32 }
  0x24   :  { %s45_s25 = sshll.u32 %s574_s24, 4  ;;  %p543_p2 = scmp.ne.s32.totalorder %s728_s3, %s542_s28  ;;  %s46_s25 = int_to_ptr.vmem [resolvable:$true] %s45_s25 }
  0x25   :  { %p546_p3 = scmp.lt.u32.totalorder %s542_s28, %s728_s3 }
  0x27   :  { %p548_p4 = pnand %p546_p3, %p543_p2 }
  0x29   :  { %551 = shalt.err (!%p548_p4)
}
  0x2a   :  { %s552_s9 = scalar_lea.vmem %s46_s25, 32  ;;  %p557_p6 = scmp.lt.s32.totalorder %s46_s25, %s46_s25 }
  0x2b   :  { %p553_p5 = scmp.ne.s32.totalorder %s46_s25, %s552_s9  ;;  %p558_p7 = scmp.lt.s32.totalorder %s552_s9, %s552_s9 }
  0x2d   :  { %p559_p8 = por %p558_p7, %p557_p6 }
  0x2f   :  { %p560_p9 = pnand %p559_p8, %p553_p5 }
  0x31   :  { %563 = shalt.err (!%p560_p9)
}
  0x32   :  { %48 = dma.hbm_to_vmem [thread:$0]  %s728_s3, 32, %s46_s25, [#allocation8]  }
  0x33   :  { %564 = dma.done.wait [#allocation6], 128  }
  0x34   :  { %565 = vsyncadd [#allocation6], 4294967168 }
  0x35   :  { %566 = dma.done.wait [#allocation8], 544  }
  0x36   :  { %567 = vsyncadd [#allocation8], 4294966752  ;;  %v575_v0 = vmov 0   ;;  %v475_v1 = vld [vmem:[#allocation7 + $0x4] ss:$8 sps:$4 sm:$0xff]   ;;  %v481_v5 = vld [vmem:[#allocation5] sm:$0xff]   ;;  %v86_v7 = vlaneseq }
  0x37   :  { %157 = vmatprep.mubr.bf16.mxu0 %v575_v0  ;;  %473 = vset.pattern.permute.xlu1 %v575_v0  ;;  %v477_v2 = vld [vmem:[#allocation7] ss:$8 sps:$4 sm:$0xff]   ;;  %v478_v3 = vld [vmem:[#allocation7 + $0x14] ss:$8 sps:$4 sm:$0xff]   ;;  %v480_v4 = vld [vmem:[#allocation7 + $0x10] ss:$8 sps:$4 sm:$0xff]  }
  0x38   :  { %474 = vset.pattern.permute.xlu0 %v575_v0  ;;  %125 = vmatprep.subr.bf16.mxu0 %v475_v1  ;;  %vm121_vm0 = vcmask 261120   ;;  %vm69_vm1 = vcmask 7168   ;;  %v576_v6 = vmov -inf   ;;  %v87_v8 = vshrl.u32 %v86_v7, 7  ;;  %v84_v10 = vld [vmem:[#allocation9] sm:$0x3] }
  0x39   :  { %126 = vmatpush1.bf16.msra.mxu0 %v477_v2  ;;  %70 = vst.msk [vmem:[#allocation2] sm:$0xff] %vm69_vm1, %v576_v6  ;;  %71 = vst.msk [vmem:[#allocation2 + $0x8] sm:$0xff] %vm69_vm1, %v576_v6  ;;  %v283_v24 = vld [vmem:[%s729_s4] sm:$0xff]  ;;  %v284_v25 = vld [vmem:[%s729_s4 + $0x8] sm:$0xff]  ;;  %v577_v27 = vmov 0.0   ;;  %s579_s22 = smov 127  }
  0x3a   :  { %127 = vmatprep.subr.bf16.mxu0 %v478_v3  ;;  %v88_v9 = vsub.s32 0, %v87_v8  ;;  %v92_v11 = vsub.s32 1, %v87_v8  ;;  %v285_v26 = vld [vmem:[%s729_s4 + $0x10] sm:$0xff]  ;;  %73 = vst.msk [vmem:[#allocation3] sm:$0xff] %vm69_vm1, %v577_v27  ;;  %74 = vst.msk [vmem:[#allocation3 + $0x8] sm:$0xff] %vm69_vm1, %v577_v27  ;;  %v453_v28 = vpack.c.bf16 %v284_v25, %v283_v24  ;;  %v286_v29 = vld [vmem:[%s729_s4 + $0x18] sm:$0xff] }
  0x3b   :  { %76 = vst.msk [vmem:[#allocation4] sm:$0xff] %vm69_vm1, %v577_v27  ;;  %77 = vst.msk [vmem:[#allocation4 + $0x8] sm:$0xff] %vm69_vm1, %v577_v27  ;;  %v433_v30 = vld [vmem:[#allocation5] sm:$0xff]   ;;  %v457_v31 = vpack.c.bf16 %v286_v29, %v285_v26  ;;  %v694_v58 = vld [vmem:[%s726_s1 + $0x8] sm:$0xff]  ;;  %v229_v8 = vand.u32 127, %v86_v7 }
  0x3c   :  { %v89_v12 = vrot.slane %v84_v10, %v88_v9  ;;  %v93_v13 = vrot.slane %v84_v10, %v92_v11  ;;  %v434_v32 = vunpack.c.l.bf16 %v433_v30  ;;  %454 = vmatprep.subr.bf16.mxu1 %v453_v28  ;;  %v435_v33 = vunpack.c.h.bf16 %v433_v30  ;;  %v699_v59 = vld [vmem:[%s726_s1] sm:$0xff]  ;;  %s578_s1 = smov 1  }
  0x3d   :  { %128 = vmatpush1.bf16.msra.mxu0 %v480_v4  ;;  %456 = vmatpush3.bf16.msra.mxu1 %v453_v28  ;;  %vm411_vm6 = vcmp.eq.s32.totalorder %v699_v59, 0  ;;  %vm412_vm7 = vcmp.eq.s32.totalorder %v694_v58, 0 }
  0x3e   :  { %450 = vmatprep.mubr.msk.f32.mxu1 %vm121_vm0, %v434_v32  ;;  %458 = vmatprep.subr.bf16.mxu1 %v457_v31  ;;  %v429_v32 = vld [vmem:[%s730_s5] ss:$0 sm:$0xff] }
  0x40   :  { %428 = vmatmul.mubr.msk.bf16.vlgmr.msra.gmra.mrb[0].mxu0 %vm121_vm0, %v481_v5  ;;  %v170_v34 = vld [vmem:[#allocation2] sm:$0xff]  ;;  %v171_v37 = vld [vmem:[#allocation2 + $0x8] sm:$0xff] }
  0x41   :  { %460 = vmatpush3.bf16.msra.mxu1 %v457_v31  ;;  %v187_v1 = vld [vmem:[#allocation3] sm:$0xff]  ;;  %v188_v5 = vld [vmem:[#allocation3 + $0x8] sm:$0xff] }
  0x44   :  { %451 = vmatmul.mubr.msk.f32.vlgmr.msra.gmra.mrb[0].mxu1 %vm121_vm0, %v435_v33 }
 0x113   :  { %v159_v14 = vpop.f32.mrb[0].mxu0 }
 0x114   :  { %v655_v15 = vadd.f32 %v159_v14, %v89_v12  ;;  %v161_v16 = vpop.f32.mrb[1].mxu0 }
 0x115   :  { %v657_v17 = vadd.f32 %v161_v16, %v93_v13  ;;  %v163_v18 = vpop.f32.mrb[2].mxu0 }
 0x116   :  { %v165_v19 = vpop.f32.mrb[3].mxu0  ;;  %v659_v20 = vadd.f32 %v163_v18, %v89_v12  ;;  %v230_v12 = vadd.s32 128, %v229_v8 }
 0x117   :  { %v661_v21 = vadd.f32 %v165_v19, %v93_v13  ;;  %v172_v22 = vmax.f32 %v655_v15, %v657_v17  ;;  %v452_v60 = vpop.f32.mrb[0].mxu1 }
 0x118   :  { %v366_v61 = vpop.f32.mrb[1].mxu1 }
 0x119   :  { %173 = vmax.xlane.f32.xlu0 %v172_v22  ;;  %v175_v23 = vmax.f32 %v659_v20, %v661_v21  ;;  %v367_v33 = vadd.f32 %v429_v32, %v366_v61 }
 0x11d   :  { %176 = vmax.xlane.f32.xlu0 %v175_v23 }
 0x1a6   :  { %v174_v35 = vpop.xlane.xlu0 %173 }
 0x1a7   :  { %v178_v36 = vmax.f32 %v170_v34, %v174_v35 }
 0x1a9   :  { %v180_v38 = vsub.f32 %v170_v34, %v178_v36  ;;  %224 = vst.msk [vmem:[#allocation2] sm:$0xff] %vm69_vm1, %v178_v36  ;;  %193 = vperm.xlu1 %473, %v178_v36   ;;  %v372_v36 = vadd.f32 %v452_v60, %v429_v32 }
 0x1aa   :  { %v177_v39 = vpop.xlane.xlu0 %176 }
 0x1ab   :  { %v179_v40 = vmax.f32 %v171_v37, %v177_v39  ;;  %v182_v62 = vmul.f32 1.442695, %v180_v38  ;;  %v236_v39 = vld [vmem:[#allocation4] sm:$0xff] }
 0x1ad   :  { %v181_v41 = vsub.f32 %v171_v37, %v179_v40  ;;  %225 = vst.msk [vmem:[#allocation2 + $0x8] sm:$0xff] %vm69_vm1, %v179_v40  ;;  %198 = vperm.xlu1 %473, %v179_v40  }
 0x1af   :  { %v184_v63 = vmul.f32 1.442695, %v181_v41 }
 0x1b0   :  { %v265_v24 = vld [vmem:[#allocation2] sm:$0xff] }
 0x1b4   :  { %v266_v28 = vld [vmem:[#allocation2 + $0x8] sm:$0xff] }
 0x228   :  { %v194_v42 = vpop.permute.xlu1 %193 }
 0x229   :  { %v201_v43 = vsub.f32 %v655_v15, %v194_v42  ;;  %v202_v44 = vsub.f32 %v657_v17, %v194_v42 }
 0x22b   :  { %v205_v45 = vmul.f32 1.442695, %v201_v43  ;;  %v207_v46 = vmul.f32 1.442695, %v202_v44 }
 0x22c   :  { %v199_v47 = vpop.permute.xlu1 %198 }
 0x22d   :  { %482 = vpow2.f32 %v205_v45  ;;  %v203_v48 = vsub.f32 %v659_v20, %v199_v47  ;;  %v204_v49 = vsub.f32 %v661_v21, %v199_v47 }
 0x22e   :  { %484 = vpow2.f32 %v207_v46 }
 0x22f   :  { %v209_v50 = vmul.f32 1.442695, %v203_v48  ;;  %v211_v51 = vmul.f32 1.442695, %v204_v49 }
 0x231   :  { %486 = vpow2.f32 %v209_v50 }
 0x232   :  { %488 = vpow2.f32 %v211_v51 }
 0x233   :  { %490 = vpow2.f32 %v182_v62 }
 0x234   :  { %492 = vpow2.f32 %v184_v63 }
 0x237   :  { %v483_v52 = vpop.eup %482 }
 0x238   :  { %v485_v53 = vpop.eup %484 }
 0x239   :  { %v213_v54 = vadd.f32 %v485_v53, %v483_v52 }
 0x23b   :  { %v487_v55 = vpop.eup %486  ;;  %214 = vadd.xlane.f32.xlu0 %v213_v54 }
 0x23c   :  { %v489_v56 = vpop.eup %488 }
 0x23d   :  { %v216_v57 = vadd.f32 %v489_v56, %v487_v55  ;;  %v491_v0 = vpop.eup %490 }
 0x23e   :  { %v189_v2 = vmul.f32 %v491_v0, %v187_v1  ;;  %v493_v3 = vpop.eup %492 }
 0x23f   :  { %217 = vadd.xlane.f32.xlu1 %v216_v57  ;;  %v190_v9 = vmul.f32 %v493_v3, %v188_v5 }
 0x250   :  { %242 = vperm.xlu1 %473, %v694_v58  }
 0x251   :  { %239 = vperm.xlu0 %474, %v699_v59  }
 0x2c8   :  { %v215_v4 = vpop.xlane.xlu0 %214 }
 0x2c9   :  { %v219_v6 = vadd.f32 %v215_v4, %v189_v2 }
 0x2cb   :  { %222 = vst.msk [vmem:[#allocation3] sm:$0xff] %vm69_vm1, %v219_v6 }
 0x2cc   :  { %v218_v10 = vpop.xlane.xlu1 %217 }
 0x2cd   :  { %v220_v11 = vadd.f32 %v218_v10, %v190_v9 }
 0x2cf   :  { %223 = vst.msk [vmem:[#allocation3 + $0x8] sm:$0xff] %vm69_vm1, %v220_v11 }
 0x2d0   :  { %v240_v13 = vpop.permute.xlu0 %239 }
 0x2d1   :  { %vm244_vm2 = vcmp.eq.s32.totalorder %v229_v8, %v240_v13  ;;  %vm245_vm3 = vcmp.eq.s32.totalorder %v230_v12, %v240_v13 }
 0x2d2   :  { %v248_v14 = vsel %vm244_vm2, %v655_v15, 0.0  ;;  %v249_v16 = vsel %vm245_vm3, %v657_v17, 0.0  ;;  %v267_v18 = vld [vmem:[#allocation3] sm:$0xff]  ;;  %v243_v15 = vpop.permute.xlu1 %242 }
 0x2d3   :  { %v252_v19 = vadd.f32 %v249_v16, %v248_v14  ;;  %494 = vlog2.f32 %v267_v18  ;;  %vm246_vm4 = vcmp.eq.s32.totalorder %v229_v8, %v243_v15  ;;  %vm247_vm5 = vcmp.eq.s32.totalorder %v230_v12, %v243_v15 }
 0x2d4   :  { %v250_v17 = vsel %vm246_vm4, %v659_v20, 0.0  ;;  %v251_v30 = vsel %vm247_vm5, %v661_v21, 0.0  ;;  %v237_v21 = vld [vmem:[#allocation4 + $0x8] sm:$0xff] }
 0x2d5   :  { %253 = vadd.xlane.f32.xlu1 %v252_v19  ;;  %v255_v31 = vadd.f32 %v251_v30, %v250_v17 }
 0x2d6   :  { %v268_v7 = vld [vmem:[#allocation3 + $0x8] sm:$0xff] }
 0x2d7   :  { %496 = vlog2.f32 %v268_v7 }
 0x2dd   :  { %v495_v22 = vpop.eup %494 }
 0x2de   :  { %v270_v23 = vmul.f32 0.6931472, %v495_v22 }
 0x2e0   :  { %v273_v25 = vadd.f32 %v270_v23, %v265_v24 }
 0x2e1   :  { %v497_v26 = vpop.eup %496 }
 0x2e2   :  { %v272_v27 = vmul.f32 0.6931472, %v497_v26  ;;  %381 = vrot.lane.b32.xlu0 %v273_v25, %s578_s1  ;;  %v375_v44 = vmul.f32 256.0, %v273_v25 }
 0x2e4   :  { %v274_v29 = vadd.f32 %v272_v27, %v266_v28  ;;  %v377_v48 = vsub.f32 %v367_v33, %v375_v44 }
 0x2e6   :  { %383 = vrot.lane.b32.xlu0 %v274_v29, %s578_s1  ;;  %v376_v47 = vmul.f32 256.0, %v274_v29 }
 0x2e8   :  { %v378_v53 = vsub.f32 %v372_v36, %v376_v47 }
 0x305   :  { %256 = vadd.xlane.f32.xlu0 %v255_v31 }
 0x354   :  { %v382_v34 = vpop.permute.xlu0 %381 }
 0x355   :  { %v387_v35 = vsub.f32 %v367_v33, %v382_v34 }
 0x357   :  { %397 = vrot.lane.b32.xlu0 %v387_v35, %s579_s22 }
 0x358   :  { %v384_v37 = vpop.permute.xlu0 %383 }
 0x359   :  { %v388_v38 = vsub.f32 %v372_v36, %v384_v37 }
 0x35b   :  { %399 = vrot.lane.b32.xlu1 %v388_v38, %s579_s22 }
 0x362   :  { %v254_v40 = vpop.xlane.xlu1 %253 }
 0x363   :  { %v258_v20 = vadd.f32 %v254_v40, %v236_v39 }
 0x365   :  { %260 = vst.msk [vmem:[#allocation4] sm:$0xff] %vm69_vm1, %v258_v20 }
 0x36c   :  { %v275_v43 = vld [vmem:[#allocation4] sm:$0xff] }
 0x36d   :  { %v277_v45 = vsub.f32 %v275_v43, %v273_v25 }
 0x36f   :  { %v389_v49 = vmul.f32 0.9, %v277_v45  ;;  %v393_v50 = vsub.f32 %v377_v48, %v277_v45 }
 0x371   :  { %v391_v55 = vsub.f32 -0.8788164, %v389_v49 }
 0x392   :  { %v257_v41 = vpop.xlane.xlu0 %256 }
 0x393   :  { %v259_v42 = vadd.f32 %v257_v41, %v237_v21 }
 0x395   :  { %261 = vst.msk [vmem:[#allocation4 + $0x8] sm:$0xff] %vm69_vm1, %v259_v42 }
 0x39c   :  { %v276_v46 = vld [vmem:[#allocation4 + $0x8] sm:$0xff] }
 0x39d   :  { %v278_v51 = vsub.f32 %v276_v46, %v274_v29 }
 0x39f   :  { %v390_v57 = vmul.f32 0.9, %v278_v51  ;;  %v394_v60 = vsub.f32 %v378_v53, %v278_v51 }
 0x3a1   :  { %v392_v1 = vsub.f32 -0.8788164, %v390_v57 }
 0x3c9   :  { %v398_v52 = vpop.permute.xlu0 %397 }
 0x3ca   :  { %v403_v54 = vsub.f32 %v393_v50, %v398_v52 }
 0x3cc   :  { %v405_v56 = vmul.f32 0.0003937008, %v403_v54 }
 0x3cd   :  { %v400_v61 = vpop.permute.xlu1 %399 }
 0x3ce   :  { %v407_v62 = vsub.f32 %v391_v55, %v405_v56  ;;  %v404_v63 = vsub.f32 %v394_v60, %v400_v61 }
 0x3d0   :  { %v413_v0 = vsel %vm411_vm6, 0.0, %v407_v62  ;;  %v406_v2 = vmul.f32 0.0003937008, %v404_v63 }
 0x3d1   :  { %415 = vst.msk [vmem:[%s731_s6] sm:$0xff] %vm69_vm1, %v413_v0 }
 0x3d2   :  { %v408_v3 = vsub.f32 %v392_v1, %v406_v2 }
 0x3d4   :  { %v414_v4 = vsel %vm412_vm7, 0.0, %v408_v3 }
 0x3d5   :  { %416 = vst.msk [vmem:[%s731_s6 + $0x8] sm:$0xff] %vm69_vm1, %v414_v4 }
 0x3d6   :  { %421 = vsyncpa [#allocation6], 1 }
 0x3d7   :  { %422 = vsyncpa [#allocation8], 1 }

</bundles_post_ra>
